<compile_context>
chip_gen: v6e
topology: v6e:2x2x1
jax: 0.10.0
libtpu: 0.0.40
codegen_flags: <defaults>
</compile_context>

<pallas_src>
import jax
import jax.numpy as jnp
from jax.experimental import pallas as pl
from jax.experimental.pallas import tpu as pltpu

# ----------------------------- static config --------------------------------

WIN = 64            # frame window (samples)
HOP_ENC = 32        # hop for hubert / wav2vec2 framing
KP = 128            # contraction dim padded to MXU/lane width
D_ENC = 128         # encoder hidden dim (lane aligned)
D_FF = 256          # encoder FFN dim (lane aligned)
D_CREPE_HID = 128   # crepe hidden dim
D_CREPE_EMB = 128   # crepe embedding dim
TM_ENC = 32         # row tile for the fused encoder kernel
TM_CREPE = 16       # row tile for the crepe kernel


# ----------------------------- Pallas kernels --------------------------------

def _layernorm_f32(x, g, b):
    mu = jnp.mean(x, axis=-1, keepdims=True)
    var = jnp.mean((x - mu) ** 2, axis=-1, keepdims=True)
    return (x - mu) * jax.lax.rsqrt(var + 1e-5) * g + b


def _encoder_fused_kernel(f_ref, wf_ref, bf_ref, g1_ref, b1_ref,
                          wp_ref, bp_ref, wff1_ref, bff1_ref,
                          wff2_ref, bff2_ref, g2_ref, b2_ref, o_ref):
    """Whole encoder-branch chain on one (TM_ENC, KP) row block.

    feat-matmul + GELU -> LN -> proj -> FFN(GELU) -> FFN -> residual -> LN.
    Matmul operands bf16, accumulation & elementwise math f32.
    """
    x = f_ref[...]                                               # bf16 (TM, KP)
    h = jnp.dot(x, wf_ref[...], preferred_element_type=jnp.float32) + bf_ref[...]
    h = jax.nn.gelu(h)
    h = _layernorm_f32(h, g1_ref[...], b1_ref[...])
    h = jnp.dot(h.astype(jnp.bfloat16), wp_ref[...],
                preferred_element_type=jnp.float32) + bp_ref[...]
    ff = jnp.dot(h.astype(jnp.bfloat16), wff1_ref[...],
                 preferred_element_type=jnp.float32) + bff1_ref[...]
    ff = jax.nn.gelu(ff)
    ff = jnp.dot(ff.astype(jnp.bfloat16), wff2_ref[...],
                 preferred_element_type=jnp.float32) + bff2_ref[...]
    h = _layernorm_f32(h + ff, g2_ref[...], b2_ref[...])
    o_ref[...] = h.astype(o_ref.dtype)


def _crepe_fused_kernel(f_ref, w1_ref, b1_ref, w2_ref, b2_ref, o_ref):
    """Crepe stand-in: matmul + ReLU -> matmul, fused in one kernel."""
    h = jnp.dot(f_ref[...], w1_ref[...],
                preferred_element_type=jnp.float32) + b1_ref[...]
    h = jnp.maximum(h, 0.0)
    h = jnp.dot(h.astype(jnp.bfloat16), w2_ref[...],
                preferred_element_type=jnp.float32) + b2_ref[...]
    o_ref[...] = h.astype(o_ref.dtype)


# ----------------------------- Pallas wrappers --------------------------------

def encoder_branches(f2_bf16, p, n_rows):
    """Run hubert + wav2vec2 stand-ins in ONE pallas_call.

    f2_bf16: [Mp, KP] shared (padded, bf16) frame slab.
    p: dict of stacked params, leading axis = 2 branches.
    Returns [2, n_rows, D_ENC] float32.
    """
    mp = f2_bf16.shape[0]
    nblk = mp // TM_ENC

    def wspec(shape):
        # per-branch parameter: squeeze the branch axis inside the kernel
        return pl.BlockSpec((None,) + shape,
                            lambda br, i, _s=len(shape): (br,) + (0,) * _s)

    out = pl.pallas_call(
        _encoder_fused_kernel,
        out_shape=jax.ShapeDtypeStruct((2, mp, D_ENC), jnp.float32),
        grid=(2, nblk),
        in_specs=[
            pl.BlockSpec((TM_ENC, KP), lambda br, i: (i, 0)),   # shared frames
            wspec((KP, D_ENC)),      # w_feat
            wspec((1, D_ENC)),       # b_feat
            wspec((1, D_ENC)),       # g1
            wspec((1, D_ENC)),       # b1
            wspec((D_ENC, D_ENC)),   # w_proj
            wspec((1, D_ENC)),       # b_proj
            wspec((D_ENC, D_FF)),    # w_ff1
            wspec((1, D_FF)),        # b_ff1
            wspec((D_FF, D_ENC)),    # w_ff2
            wspec((1, D_ENC)),       # b_ff2
            wspec((1, D_ENC)),       # g2
            wspec((1, D_ENC)),       # b2
        ],
        out_specs=pl.BlockSpec((None, TM_ENC, D_ENC), lambda br, i: (br, i, 0)),
        compiler_params=pltpu.CompilerParams(
            dimension_semantics=("parallel", "parallel")),
    )(f2_bf16,
      p["w_feat"], p["b_feat"], p["g1"], p["b1"],
      p["w_proj"], p["b_proj"], p["w_ff1"], p["b_ff1"],
      p["w_ff2"], p["b_ff2"], p["g2"], p["b2"])
    return out[:, :n_rows, :]


def crepe_branch(c2_bf16, p, n_rows):
    """c2_bf16: [Mp, KP] padded bf16 crepe frame slab -> [n_rows, D_CREPE_EMB]."""
    mp = c2_bf16.shape[0]
    nblk = mp // TM_CREPE
    out = pl.pallas_call(
        _crepe_fused_kernel,
        out_shape=jax.ShapeDtypeStruct((mp, D_CREPE_EMB), jnp.float32),
        grid=(nblk,),
        in_specs=[
            pl.BlockSpec((TM_CREPE, KP), lambda i: (i, 0)),
            pl.BlockSpec((KP, D_CREPE_HID), lambda i: (0, 0)),
            pl.BlockSpec((1, D_CREPE_HID), lambda i: (0, 0)),
            pl.BlockSpec((D_CREPE_HID, D_CREPE_EMB), lambda i: (0, 0)),
            pl.BlockSpec((1, D_CREPE_EMB), lambda i: (0, 0)),
        ],
        out_specs=pl.BlockSpec((TM_CREPE, D_CREPE_EMB), lambda i: (i, 0)),
        compiler_params=pltpu.CompilerParams(dimension_semantics=("parallel",)),
    )(c2_bf16, p["w1"], p["b1"], p["w2"], p["b2"])
    return out[:n_rows]


# ------------------------------- glue (JAX) -----------------------------------

def frame_signal(x, win, hop, pad):
    """x: [B, S] -> frames [B, T, win].  pad=True centre-pads (torchcrepe style)."""
    b, s = x.shape
    if pad:
        x = jnp.pad(x, ((0, 0), (win // 2, win // 2)))
        n_frames = 1 + s // hop
    else:
        n_frames = 1 + (s - win) // hop
    starts = jnp.arange(n_frames) * hop
    idx = starts[:, None] + jnp.arange(win)[None, :]
    return x[:, idx]  # [B, T, win]


def _pad_and_cast(f2, row_mult):
    """Pad rows to a multiple of row_mult and contraction dim to KP; cast bf16."""
    m, k = f2.shape
    mp = ((m + row_mult - 1) // row_mult) * row_mult
    f2 = jnp.pad(f2, ((0, mp - m), (0, KP - k)))
    return f2.astype(jnp.bfloat16), m


def _init_linear(key, k, n, scale=0.02):
    kw, kb = jax.random.split(key)
    w = scale * jax.random.normal(kw, (k, n), jnp.float32)
    b = scale * jax.random.normal(kb, (n,), jnp.float32)
    return w, b


def init_encoder_params(key, win, d, d_ff):
    keys = jax.random.split(key, 4)
    p = {}
    wf, bf = _init_linear(keys[0], win, d)
    p["w_feat"] = jnp.pad(wf, ((0, KP - win), (0, 0)))   # K padded to 128 (zeros)
    p["b_feat"] = bf
    p["g1"], p["b1"] = jnp.ones((d,), jnp.float32), jnp.zeros((d,), jnp.float32)
    p["w_proj"], p["b_proj"] = _init_linear(keys[1], d, d)
    p["w_ff1"], p["b_ff1"] = _init_linear(keys[2], d, d_ff)
    p["w_ff2"], p["b_ff2"] = _init_linear(keys[3], d_ff, d)
    p["g2"], p["b2"] = jnp.ones((d,), jnp.float32), jnp.zeros((d,), jnp.float32)
    return p


def stack_encoder_params(p_hubert, p_w2v2):
    """Stack the two encoder branches along a leading axis of size 2."""
    stacked = {}
    for name in p_hubert:
        a = jnp.stack([p_hubert[name], p_w2v2[name]], axis=0)
        if name.startswith("w_"):
            stacked[name] = a.astype(jnp.bfloat16)       # MXU operands in bf16
        else:
            stacked[name] = a.reshape(2, 1, -1)           # biases / LN params f32
    return stacked


def init_crepe_params(key, win, d_hid, d_emb):
    keys = jax.random.split(key, 2)
    w1, b1 = _init_linear(keys[0], win, d_hid)
    w2, b2 = _init_linear(keys[1], d_hid, d_emb)
    return {
        "w1": jnp.pad(w1, ((0, KP - win), (0, 0))).astype(jnp.bfloat16),
        "b1": b1.reshape(1, d_hid),
        "w2": w2.astype(jnp.bfloat16),
        "b2": b2.reshape(1, d_emb),
    }


def xwc_avg_forward(x, hop_size_samples, params):
    b = x.shape[0]

    # hubert & wav2vec2 share identical framing (win=64, hop=32): compute once.
    frames = frame_signal(x, WIN, HOP_ENC, pad=False)          # [B, T, WIN]
    t_enc = frames.shape[1]
    f2, m_enc = _pad_and_cast(frames.reshape(b * t_enc, WIN), TM_ENC)
    enc = encoder_branches(f2, params["enc"], m_enc)           # [2, M, D_ENC]
    hubert_out = enc[0].reshape(b, t_enc, D_ENC)
    wav2vec2_out = enc[1].reshape(b, t_enc, D_ENC)

    # crepe branch: framed by hop_size_samples, pad=True (torchcrepe style).
    cframes = frame_signal(x, WIN, hop_size_samples, pad=True)  # [B, Tc, WIN]
    t_c = cframes.shape[1]
    c2, m_c = _pad_and_cast(cframes.reshape(b * t_c, WIN), TM_CREPE)
    crepe_out = crepe_branch(c2, params["crepe"], m_c).reshape(b, t_c, D_CREPE_EMB)

    return hubert_out, wav2vec2_out, crepe_out


# --------------------------------- main ---------------------------------------

if __name__ == "__main__":
    key = jax.random.PRNGKey(0)
    k_x, k_h, k_w, k_c = jax.random.split(key, 4)

    B, S = 2, 1024
    hop_size_samples = 160

    x = jax.random.normal(k_x, (B, S), jnp.float32)

    params = {
        "enc": stack_encoder_params(
            init_encoder_params(k_h, WIN, D_ENC, D_FF),
            init_encoder_params(k_w, WIN, D_ENC, D_FF)),
        "crepe": init_crepe_params(k_c, WIN, D_CREPE_HID, D_CREPE_EMB),
    }

    fwd = jax.jit(xwc_avg_forward, static_argnums=(1,))
    hubert_out, wav2vec2_out, crepe_out = fwd(x, hop_size_samples, params)
    jax.block_until_ready((hubert_out, wav2vec2_out, crepe_out))

    assert hubert_out.ndim == 3 and hubert_out.shape[0] == B
    assert wav2vec2_out.ndim == 3 and wav2vec2_out.shape[0] == B
    assert crepe_out.ndim == 3 and crepe_out.shape[0] == B
    assert crepe_out.shape[1] == 1 + S // hop_size_samples
    assert hubert_out.shape == (B, 1 + (S - WIN) // HOP_ENC, D_ENC)
    assert wav2vec2_out.shape == hubert_out.shape

    print("KERNEL_OK")
</pallas_src>

<mosaic_0001>
module attributes {stable_mosaic.version = 11 : i64} {
  func.func @_crepe_fused_kernel(%arg0: i32, %arg1: memref<16x128xbf16, #tpu.memory_space<vmem>>, %arg2: memref<128x128xbf16, #tpu.memory_space<vmem>>, %arg3: memref<1x128xf32, #tpu.memory_space<vmem>>, %arg4: memref<128x128xbf16, #tpu.memory_space<vmem>>, %arg5: memref<1x128xf32, #tpu.memory_space<vmem>>, %arg6: memref<16x128xf32, #tpu.memory_space<vmem>>) attributes {dimension_semantics = [#tpu.dimension_semantics<parallel>], iteration_bounds = array<i64: 1>, scalar_prefetch = 0 : i64, scratch_operands = 0 : i64, tpu.core_type = #tpu.core_type<tc>, window_params = [{transform_indices = @transform_0, window_bounds = array<i64: 16, 128>}, {pipeline_mode = #tpu.pipeline_mode<synchronous>, transform_indices = @transform_1, window_bounds = array<i64: 128, 128>}, {pipeline_mode = #tpu.pipeline_mode<synchronous>, transform_indices = @transform_2, window_bounds = array<i64: 1, 128>}, {pipeline_mode = #tpu.pipeline_mode<synchronous>, transform_indices = @transform_3, window_bounds = array<i64: 128, 128>}, {pipeline_mode = #tpu.pipeline_mode<synchronous>, transform_indices = @transform_4, window_bounds = array<i64: 1, 128>}, {transform_indices = @transform_5, window_bounds = array<i64: 16, 128>}]} {
    %c0 = arith.constant 0 : index
    %c0_0 = arith.constant 0 : index
    %0 = vector.load %arg1[%c0, %c0_0] : memref<16x128xbf16, #tpu.memory_space<vmem>>, vector<16x128xbf16>
    %c0_1 = arith.constant 0 : index
    %c0_2 = arith.constant 0 : index
    %1 = vector.load %arg2[%c0_1, %c0_2] : memref<128x128xbf16, #tpu.memory_space<vmem>>, vector<128x128xbf16>
    %cst = arith.constant dense<0.000000e+00> : vector<16x128xf32>
    %2 = tpu.matmul %0, %1, %cst {dimension_numbers = #tpu.dot_dimension_numbers<[1], [0], [0], [1], [0, 0, 1, 1], [], []>} : vector<16x128xbf16>, vector<128x128xbf16>, vector<16x128xf32> -> vector<16x128xf32>
    %c0_3 = arith.constant 0 : index
    %c0_4 = arith.constant 0 : index
    %3 = vector.load %arg3[%c0_3, %c0_4] : memref<1x128xf32, #tpu.memory_space<vmem>>, vector<1x128xf32>
    %4 = vector.broadcast %3 : vector<1x128xf32> to vector<16x128xf32>
    %5 = arith.addf %2, %4 : vector<16x128xf32>
    %cst_5 = arith.constant 0.000000e+00 : f32
    %6 = vector.broadcast %cst_5 : f32 to vector<16x128xf32>
    %7 = arith.maximumf %5, %6 : vector<16x128xf32>
    %8 = arith.truncf %7 : vector<16x128xf32> to vector<16x128xbf16>
    %c0_6 = arith.constant 0 : index
    %c0_7 = arith.constant 0 : index
    %9 = vector.load %arg4[%c0_6, %c0_7] : memref<128x128xbf16, #tpu.memory_space<vmem>>, vector<128x128xbf16>
    %cst_8 = arith.constant dense<0.000000e+00> : vector<16x128xf32>
    %10 = tpu.matmul %8, %9, %cst_8 {dimension_numbers = #tpu.dot_dimension_numbers<[1], [0], [0], [1], [0, 0, 1, 1], [], []>} : vector<16x128xbf16>, vector<128x128xbf16>, vector<16x128xf32> -> vector<16x128xf32>
    %c0_9 = arith.constant 0 : index
    %c0_10 = arith.constant 0 : index
    %11 = vector.load %arg5[%c0_9, %c0_10] : memref<1x128xf32, #tpu.memory_space<vmem>>, vector<1x128xf32>
    %12 = vector.broadcast %11 : vector<1x128xf32> to vector<16x128xf32>
    %13 = arith.addf %10, %12 : vector<16x128xf32>
    %c0_11 = arith.constant 0 : index
    %c0_12 = arith.constant 0 : index
    %14 = vector.load %arg6[%c0_11, %c0_12] : memref<16x128xf32, #tpu.memory_space<vmem>>, vector<16x128xf32>
    tpu.vector_store %arg6[%c0_11, %c0_12], %13 {strides = array<i32>} : memref<16x128xf32, #tpu.memory_space<vmem>>, vector<16x128xf32>,
    return
  }
  func.func @transform_0(%arg0: i32) -> (i32, i32) {
    %c0_i32 = arith.constant 0 : i32
    %c0_i32_0 = arith.constant 0 : i32
    return %arg0, %c0_i32 : i32, i32
  }
  func.func @transform_1(%arg0: i32) -> (i32, i32) {
    %c0_i32 = arith.constant 0 : i32
    %c0_i32_0 = arith.constant 0 : i32
    %c0_i32_1 = arith.constant 0 : i32
    return %c0_i32, %c0_i32_0 : i32, i32
  }
  func.func @transform_2(%arg0: i32) -> (i32, i32) {
    %c0_i32 = arith.constant 0 : i32
    %c0_i32_0 = arith.constant 0 : i32
    %c0_i32_1 = arith.constant 0 : i32
    return %c0_i32, %c0_i32_0 : i32, i32
  }
  func.func @transform_3(%arg0: i32) -> (i32, i32) {
    %c0_i32 = arith.constant 0 : i32
    %c0_i32_0 = arith.constant 0 : i32
    %c0_i32_1 = arith.constant 0 : i32
    return %c0_i32, %c0_i32_0 : i32, i32
  }
  func.func @transform_4(%arg0: i32) -> (i32, i32) {
    %c0_i32 = arith.constant 0 : i32
    %c0_i32_0 = arith.constant 0 : i32
    %c0_i32_1 = arith.constant 0 : i32
    return %c0_i32, %c0_i32_0 : i32, i32
  }
  func.func @transform_5(%arg0: i32) -> (i32, i32) {
    %c0_i32 = arith.constant 0 : i32
    %c0_i32_0 = arith.constant 0 : i32
    return %arg0, %c0_i32 : i32, i32
  }
}

module attributes {stable_mosaic.version = 11 : i64} {
  func.func @_encoder_fused_kernel(%arg0: i32, %arg1: i32, %arg2: memref<32x128xbf16, #tpu.memory_space<vmem>>, %arg3: memref<1x128x128xbf16, #tpu.memory_space<vmem>>, %arg4: memref<1x1x128xf32, #tpu.memory_space<vmem>>, %arg5: memref<1x1x128xf32, #tpu.memory_space<vmem>>, %arg6: memref<1x1x128xf32, #tpu.memory_space<vmem>>, %arg7: memref<1x128x128xbf16, #tpu.memory_space<vmem>>, %arg8: memref<1x1x128xf32, #tpu.memory_space<vmem>>, %arg9: memref<1x128x256xbf16, #tpu.memory_space<vmem>>, %arg10: memref<1x1x256xf32, #tpu.memory_space<vmem>>, %arg11: memref<1x256x128xbf16, #tpu.memory_space<vmem>>, %arg12: memref<1x1x128xf32, #tpu.memory_space<vmem>>, %arg13: memref<1x1x128xf32, #tpu.memory_space<vmem>>, %arg14: memref<1x1x128xf32, #tpu.memory_space<vmem>>, %arg15: memref<1x32x128xf32, #tpu.memory_space<vmem>>) attributes {dimension_semantics = [#tpu.dimension_semantics<parallel>, #tpu.dimension_semantics<parallel>], iteration_bounds = array<i64: 2, 2>, scalar_prefetch = 0 : i64, scratch_operands = 0 : i64, tpu.core_type = #tpu.core_type<tc>, window_params = [{transform_indices = @transform_0, window_bounds = array<i64: 32, 128>}, {transform_indices = @transform_1, window_bounds = array<i64: 1, 128, 128>}, {transform_indices = @transform_2, window_bounds = array<i64: 1, 1, 128>}, {transform_indices = @transform_3, window_bounds = array<i64: 1, 1, 128>}, {transform_indices = @transform_4, window_bounds = array<i64: 1, 1, 128>}, {transform_indices = @transform_5, window_bounds = array<i64: 1, 128, 128>}, {transform_indices = @transform_6, window_bounds = array<i64: 1, 1, 128>}, {transform_indices = @transform_7, window_bounds = array<i64: 1, 128, 256>}, {transform_indices = @transform_8, window_bounds = array<i64: 1, 1, 256>}, {transform_indices = @transform_9, window_bounds = array<i64: 1, 256, 128>}, {transform_indices = @transform_10, window_bounds = array<i64: 1, 1, 128>}, {transform_indices = @transform_11, window_bounds = array<i64: 1, 1, 128>}, {transform_indices = @transform_12, window_bounds = array<i64: 1, 1, 128>}, {transform_indices = @transform_13, window_bounds = array<i64: 1, 32, 128>}]} {
    %c0 = arith.constant 0 : index
    %c0_0 = arith.constant 0 : index
    %0 = vector.load %arg2[%c0, %c0_0] : memref<32x128xbf16, #tpu.memory_space<vmem>>, vector<32x128xbf16>
    %c0_1 = arith.constant 0 : index
    %c0_2 = arith.constant 0 : index
    %c0_3 = arith.constant 0 : index
    %1 = vector.load %arg3[%c0_1, %c0_2, %c0_3] : memref<1x128x128xbf16, #tpu.memory_space<vmem>>, vector<1x128x128xbf16>
    %2 = vector.shape_cast %1 : vector<1x128x128xbf16> to vector<128x128xbf16>
    %cst = arith.constant dense<0.000000e+00> : vector<32x128xf32>
    %3 = tpu.matmul %0, %2, %cst {dimension_numbers = #tpu.dot_dimension_numbers<[1], [0], [0], [1], [0, 0, 1, 1], [], []>} : vector<32x128xbf16>, vector<128x128xbf16>, vector<32x128xf32> -> vector<32x128xf32>
    %c0_4 = arith.constant 0 : index
    %c0_5 = arith.constant 0 : index
    %c0_6 = arith.constant 0 : index
    %4 = vector.load %arg4[%c0_4, %c0_5, %c0_6] : memref<1x1x128xf32, #tpu.memory_space<vmem>>, vector<1x1x128xf32>
    %5 = vector.shape_cast %4 : vector<1x1x128xf32> to vector<1x128xf32>
    %6 = vector.broadcast %5 : vector<1x128xf32> to vector<32x128xf32>
    %7 = arith.addf %3, %6 : vector<32x128xf32>
    %8 = arith.mulf %7, %7 : vector<32x128xf32>
    %9 = arith.mulf %7, %8 : vector<32x128xf32>
    %cst_7 = arith.constant 4.471500e-02 : f32
    %10 = vector.broadcast %cst_7 : f32 to vector<32x128xf32>
    %11 = arith.mulf %10, %9 : vector<32x128xf32>
    %12 = arith.addf %7, %11 : vector<32x128xf32>
    %cst_8 = arith.constant 0.797884583 : f32
    %13 = vector.broadcast %cst_8 : f32 to vector<32x128xf32>
    %14 = arith.mulf %13, %12 : vector<32x128xf32>
    %15 = math.tanh %14 : vector<32x128xf32>
    %cst_9 = arith.constant 1.000000e+00 : f32
    %16 = vector.broadcast %cst_9 : f32 to vector<32x128xf32>
    %17 = arith.addf %16, %15 : vector<32x128xf32>
    %cst_10 = arith.constant 5.000000e-01 : f32
    %18 = vector.broadcast %cst_10 : f32 to vector<32x128xf32>
    %19 = arith.mulf %18, %17 : vector<32x128xf32>
    %20 = arith.mulf %7, %19 : vector<32x128xf32>
    %c0_11 = arith.constant 0 : index
    %c0_12 = arith.constant 0 : index
    %c0_13 = arith.constant 0 : index
    %21 = vector.load %arg5[%c0_11, %c0_12, %c0_13] : memref<1x1x128xf32, #tpu.memory_space<vmem>>, vector<1x1x128xf32>
    %22 = vector.shape_cast %21 : vector<1x1x128xf32> to vector<1x128xf32>
    %c0_14 = arith.constant 0 : index
    %c0_15 = arith.constant 0 : index
    %c0_16 = arith.constant 0 : index
    %23 = vector.load %arg6[%c0_14, %c0_15, %c0_16] : memref<1x1x128xf32, #tpu.memory_space<vmem>>, vector<1x1x128xf32>
    %24 = vector.shape_cast %23 : vector<1x1x128xf32> to vector<1x128xf32>
    %cst_17 = arith.constant dense<0.000000e+00> : vector<32xf32>
    %25 = vector.multi_reduction <add>, %20, %cst_17 [1] : vector<32x128xf32> to vector<32xf32>
    %26 = vector.shape_cast %25 : vector<32xf32> to vector<32x1xf32>
    %cst_18 = arith.constant 1.280000e+02 : f32
    %27 = vector.broadcast %cst_18 : f32 to vector<32x1xf32>
    %28 = arith.divf %26, %27 : vector<32x1xf32>
    %29 = vector.broadcast %28 : vector<32x1xf32> to vector<32x128xf32>
    %30 = arith.subf %20, %29 : vector<32x128xf32>
    %31 = arith.mulf %30, %30 : vector<32x128xf32>
    %cst_19 = arith.constant dense<0.000000e+00> : vector<32xf32>
    %32 = vector.multi_reduction <add>, %31, %cst_19 [1] : vector<32x128xf32> to vector<32xf32>
    %33 = vector.shape_cast %32 : vector<32xf32> to vector<32x1xf32>
    %cst_20 = arith.constant 1.280000e+02 : f32
    %34 = vector.broadcast %cst_20 : f32 to vector<32x1xf32>
    %35 = arith.divf %33, %34 : vector<32x1xf32>
    %36 = vector.broadcast %28 : vector<32x1xf32> to vector<32x128xf32>
    %37 = arith.subf %20, %36 : vector<32x128xf32>
    %cst_21 = arith.constant 9.99999974E-6 : f32
    %38 = vector.broadcast %cst_21 : f32 to vector<32x1xf32>
    %39 = arith.addf %35, %38 : vector<32x1xf32>
    %40 = math.rsqrt %39 : vector<32x1xf32>
    %41 = vector.broadcast %40 : vector<32x1xf32> to vector<32x128xf32>
    %42 = arith.mulf %37, %41 : vector<32x128xf32>
    %43 = vector.broadcast %22 : vector<1x128xf32> to vector<32x128xf32>
    %44 = arith.mulf %42, %43 : vector<32x128xf32>
    %45 = vector.broadcast %24 : vector<1x128xf32> to vector<32x128xf32>
    %46 = arith.addf %44, %45 : vector<32x128xf32>
    %47 = arith.truncf %46 : vector<32x128xf32> to vector<32x128xbf16>
    %c0_22 = arith.constant 0 : index
    %c0_23 = arith.constant 0 : index
    %c0_24 = arith.constant 0 : index
    %48 = vector.load %arg7[%c0_22, %c0_23, %c0_24] : memref<1x128x128xbf16, #tpu.memory_space<vmem>>, vector<1x128x128xbf16>
    %49 = vector.shape_cast %48 : vector<1x128x128xbf16> to vector<128x128xbf16>
    %cst_25 = arith.constant dense<0.000000e+00> : vector<32x128xf32>
    %50 = tpu.matmul %47, %49, %cst_25 {dimension_numbers = #tpu.dot_dimension_numbers<[1], [0], [0], [1], [0, 0, 1, 1], [], []>} : vector<32x128xbf16>, vector<128x128xbf16>, vector<32x128xf32> -> vector<32x128xf32>
    %c0_26 = arith.constant 0 : index
    %c0_27 = arith.constant 0 : index
    %c0_28 = arith.constant 0 : index
    %51 = vector.load %arg8[%c0_26, %c0_27, %c0_28] : memref<1x1x128xf32, #tpu.memory_space<vmem>>, vector<1x1x128xf32>
    %52 = vector.shape_cast %51 : vector<1x1x128xf32> to vector<1x128xf32>
    %53 = vector.broadcast %52 : vector<1x128xf32> to vector<32x128xf32>
    %54 = arith.addf %50, %53 : vector<32x128xf32>
    %55 = arith.truncf %54 : vector<32x128xf32> to vector<32x128xbf16>
    %c0_29 = arith.constant 0 : index
    %c0_30 = arith.constant 0 : index
    %c0_31 = arith.constant 0 : index
    %56 = vector.load %arg9[%c0_29, %c0_30, %c0_31] : memref<1x128x256xbf16, #tpu.memory_space<vmem>>, vector<1x128x256xbf16>
    %57 = vector.shape_cast %56 : vector<1x128x256xbf16> to vector<128x256xbf16>
    %cst_32 = arith.constant dense<0.000000e+00> : vector<32x256xf32>
    %58 = tpu.matmul %55, %57, %cst_32 {dimension_numbers = #tpu.dot_dimension_numbers<[1], [0], [0], [1], [0, 0, 1, 1], [], []>} : vector<32x128xbf16>, vector<128x256xbf16>, vector<32x256xf32> -> vector<32x256xf32>
    %c0_33 = arith.constant 0 : index
    %c0_34 = arith.constant 0 : index
    %c0_35 = arith.constant 0 : index
    %59 = vector.load %arg10[%c0_33, %c0_34, %c0_35] : memref<1x1x256xf32, #tpu.memory_space<vmem>>, vector<1x1x256xf32>
    %60 = vector.shape_cast %59 : vector<1x1x256xf32> to vector<1x256xf32>
    %61 = vector.broadcast %60 : vector<1x256xf32> to vector<32x256xf32>
    %62 = arith.addf %58, %61 : vector<32x256xf32>
    %63 = arith.mulf %62, %62 : vector<32x256xf32>
    %64 = arith.mulf %62, %63 : vector<32x256xf32>
    %cst_36 = arith.constant 4.471500e-02 : f32
    %65 = vector.broadcast %cst_36 : f32 to vector<32x256xf32>
    %66 = arith.mulf %65, %64 : vector<32x256xf32>
    %67 = arith.addf %62, %66 : vector<32x256xf32>
    %cst_37 = arith.constant 0.797884583 : f32
    %68 = vector.broadcast %cst_37 : f32 to vector<32x256xf32>
    %69 = arith.mulf %68, %67 : vector<32x256xf32>
    %70 = math.tanh %69 : vector<32x256xf32>
    %cst_38 = arith.constant 1.000000e+00 : f32
    %71 = vector.broadcast %cst_38 : f32 to vector<32x256xf32>
    %72 = arith.addf %71, %70 : vector<32x256xf32>
    %cst_39 = arith.constant 5.000000e-01 : f32
    %73 = vector.broadcast %cst_39 : f32 to vector<32x256xf32>
    %74 = arith.mulf %73, %72 : vector<32x256xf32>
    %75 = arith.mulf %62, %74 : vector<32x256xf32>
    %76 = arith.truncf %75 : vector<32x256xf32> to vector<32x256xbf16>
    %c0_40 = arith.constant 0 : index
    %c0_41 = arith.constant 0 : index
    %c0_42 = arith.constant 0 : index
    %77 = vector.load %arg11[%c0_40, %c0_41, %c0_42] : memref<1x256x128xbf16, #tpu.memory_space<vmem>>, vector<1x256x128xbf16>
    %78 = vector.shape_cast %77 : vector<1x256x128xbf16> to vector<256x128xbf16>
    %cst_43 = arith.constant dense<0.000000e+00> : vector<32x128xf32>
    %79 = tpu.matmul %76, %78, %cst_43 {dimension_numbers = #tpu.dot_dimension_numbers<[1], [0], [0], [1], [0, 0, 1, 1], [], []>} : vector<32x256xbf16>, vector<256x128xbf16>, vector<32x128xf32> -> vector<32x128xf32>
    %c0_44 = arith.constant 0 : index
    %c0_45 = arith.constant 0 : index
    %c0_46 = arith.constant 0 : index
    %80 = vector.load %arg12[%c0_44, %c0_45, %c0_46] : memref<1x1x128xf32, #tpu.memory_space<vmem>>, vector<1x1x128xf32>
    %81 = vector.shape_cast %80 : vector<1x1x128xf32> to vector<1x128xf32>
    %82 = vector.broadcast %81 : vector<1x128xf32> to vector<32x128xf32>
    %83 = arith.addf %79, %82 : vector<32x128xf32>
    %84 = arith.addf %54, %83 : vector<32x128xf32>
    %c0_47 = arith.constant 0 : index
    %c0_48 = arith.constant 0 : index
    %c0_49 = arith.constant 0 : index
    %85 = vector.load %arg13[%c0_47, %c0_48, %c0_49] : memref<1x1x128xf32, #tpu.memory_space<vmem>>, vector<1x1x128xf32>
    %86 = vector.shape_cast %85 : vector<1x1x128xf32> to vector<1x128xf32>
    %c0_50 = arith.constant 0 : index
    %c0_51 = arith.constant 0 : index
    %c0_52 = arith.constant 0 : index
    %87 = vector.load %arg14[%c0_50, %c0_51, %c0_52] : memref<1x1x128xf32, #tpu.memory_space<vmem>>, vector<1x1x128xf32>
    %88 = vector.shape_cast %87 : vector<1x1x128xf32> to vector<1x128xf32>
    %cst_53 = arith.constant dense<0.000000e+00> : vector<32xf32>
    %89 = vector.multi_reduction <add>, %84, %cst_53 [1] : vector<32x128xf32> to vector<32xf32>
    %90 = vector.shape_cast %89 : vector<32xf32> to vector<32x1xf32>
    %cst_54 = arith.constant 1.280000e+02 : f32
    %91 = vector.broadcast %cst_54 : f32 to vector<32x1xf32>
    %92 = arith.divf %90, %91 : vector<32x1xf32>
    %93 = vector.broadcast %92 : vector<32x1xf32> to vector<32x128xf32>
    %94 = arith.subf %84, %93 : vector<32x128xf32>
    %95 = arith.mulf %94, %94 : vector<32x128xf32>
    %cst_55 = arith.constant dense<0.000000e+00> : vector<32xf32>
    %96 = vector.multi_reduction <add>, %95, %cst_55 [1] : vector<32x128xf32> to vector<32xf32>
    %97 = vector.shape_cast %96 : vector<32xf32> to vector<32x1xf32>
    %cst_56 = arith.constant 1.280000e+02 : f32
    %98 = vector.broadcast %cst_56 : f32 to vector<32x1xf32>
    %99 = arith.divf %97, %98 : vector<32x1xf32>
    %100 = vector.broadcast %92 : vector<32x1xf32> to vector<32x128xf32>
    %101 = arith.subf %84, %100 : vector<32x128xf32>
    %cst_57 = arith.constant 9.99999974E-6 : f32
    %102 = vector.broadcast %cst_57 : f32 to vector<32x1xf32>
    %103 = arith.addf %99, %102 : vector<32x1xf32>
    %104 = math.rsqrt %103 : vector<32x1xf32>
    %105 = vector.broadcast %104 : vector<32x1xf32> to vector<32x128xf32>
    %106 = arith.mulf %101, %105 : vector<32x128xf32>
    %107 = vector.broadcast %86 : vector<1x128xf32> to vector<32x128xf32>
    %108 = arith.mulf %106, %107 : vector<32x128xf32>
    %109 = vector.broadcast %88 : vector<1x128xf32> to vector<32x128xf32>
    %110 = arith.addf %108, %109 : vector<32x128xf32>
    %c0_58 = arith.constant 0 : index
    %c0_59 = arith.constant 0 : index
    %c0_60 = arith.constant 0 : index
    %111 = vector.load %arg15[%c0_58, %c0_59, %c0_60] : memref<1x32x128xf32, #tpu.memory_space<vmem>>, vector<1x32x128xf32>
    %112 = vector.shape_cast %111 : vector<1x32x128xf32> to vector<32x128xf32>
    %113 = vector.shape_cast %110 : vector<32x128xf32> to vector<1x32x128xf32>
    tpu.vector_store %arg15[%c0_58, %c0_59, %c0_60], %113 {strides = array<i32>} : memref<1x32x128xf32, #tpu.memory_space<vmem>>, vector<1x32x128xf32>,
    return
  }
  func.func @transform_0(%arg0: i32, %arg1: i32) -> (i32, i32) {
    %c0_i32 = arith.constant 0 : i32
    %c0_i32_0 = arith.constant 0 : i32
    return %arg1, %c0_i32 : i32, i32
  }
  func.func @transform_1(%arg0: i32, %arg1: i32) -> (i32, i32, i32) {
    %c0_i32 = arith.constant 0 : i32
    %c0_i32_0 = arith.constant 0 : i32
    %c0_i32_1 = arith.constant 0 : i32
    return %arg0, %c0_i32, %c0_i32_0 : i32, i32, i32
  }
  func.func @transform_2(%arg0: i32, %arg1: i32) -> (i32, i32, i32) {
    %c0_i32 = arith.constant 0 : i32
    %c0_i32_0 = arith.constant 0 : i32
    %c0_i32_1 = arith.constant 0 : i32
    return %arg0, %c0_i32, %c0_i32_0 : i32, i32, i32
  }
  func.func @transform_3(%arg0: i32, %arg1: i32) -> (i32, i32, i32) {
    %c0_i32 = arith.constant 0 : i32
    %c0_i32_0 = arith.constant 0 : i32
    %c0_i32_1 = arith.constant 0 : i32
    return %arg0, %c0_i32, %c0_i32_0 : i32, i32, i32
  }
  func.func @transform_4(%arg0: i32, %arg1: i32) -> (i32, i32, i32) {
    %c0_i32 = arith.constant 0 : i32
    %c0_i32_0 = arith.constant 0 : i32
    %c0_i32_1 = arith.constant 0 : i32
    return %arg0, %c0_i32, %c0_i32_0 : i32, i32, i32
  }
  func.func @transform_5(%arg0: i32, %arg1: i32) -> (i32, i32, i32) {
    %c0_i32 = arith.constant 0 : i32
    %c0_i32_0 = arith.constant 0 : i32
    %c0_i32_1 = arith.constant 0 : i32
    return %arg0, %c0_i32, %c0_i32_0 : i32, i32, i32
  }
  func.func @transform_6(%arg0: i32, %arg1: i32) -> (i32, i32, i32) {
    %c0_i32 = arith.constant 0 : i32
    %c0_i32_0 = arith.constant 0 : i32
    %c0_i32_1 = arith.constant 0 : i32
    return %arg0, %c0_i32, %c0_i32_0 : i32, i32, i32
  }
  func.func @transform_7(%arg0: i32, %arg1: i32) -> (i32, i32, i32) {
    %c0_i32 = arith.constant 0 : i32
    %c0_i32_0 = arith.constant 0 : i32
    %c0_i32_1 = arith.constant 0 : i32
    return %arg0, %c0_i32, %c0_i32_0 : i32, i32, i32
  }
  func.func @transform_8(%arg0: i32, %arg1: i32) -> (i32, i32, i32) {
    %c0_i32 = arith.constant 0 : i32
    %c0_i32_0 = arith.constant 0 : i32
    %c0_i32_1 = arith.constant 0 : i32
    return %arg0, %c0_i32, %c0_i32_0 : i32, i32, i32
  }
  func.func @transform_9(%arg0: i32, %arg1: i32) -> (i32, i32, i32) {
    %c0_i32 = arith.constant 0 : i32
    %c0_i32_0 = arith.constant 0 : i32
    %c0_i32_1 = arith.constant 0 : i32
    return %arg0, %c0_i32, %c0_i32_0 : i32, i32, i32
  }
  func.func @transform_10(%arg0: i32, %arg1: i32) -> (i32, i32, i32) {
    %c0_i32 = arith.constant 0 : i32
    %c0_i32_0 = arith.constant 0 : i32
    %c0_i32_1 = arith.constant 0 : i32
    return %arg0, %c0_i32, %c0_i32_0 : i32, i32, i32
  }
  func.func @transform_11(%arg0: i32, %arg1: i32) -> (i32, i32, i32) {
    %c0_i32 = arith.constant 0 : i32
    %c0_i32_0 = arith.constant 0 : i32
    %c0_i32_1 = arith.constant 0 : i32
    return %arg0, %c0_i32, %c0_i32_0 : i32, i32, i32
  }
  func.func @transform_12(%arg0: i32, %arg1: i32) -> (i32, i32, i32) {
    %c0_i32 = arith.constant 0 : i32
    %c0_i32_0 = arith.constant 0 : i32
    %c0_i32_1 = arith.constant 0 : i32
    return %arg0, %c0_i32, %c0_i32_0 : i32, i32, i32
  }
  func.func @transform_13(%arg0: i32, %arg1: i32) -> (i32, i32, i32) {
    %c0_i32 = arith.constant 0 : i32
    %c0_i32_0 = arith.constant 0 : i32
    return %arg0, %arg1, %c0_i32 : i32, i32, i32
  }
}

</mosaic_0001>

<bundles_post_ra>
// kernel: squeeze.3
= control target key start
LH: loop header
LB: loop body
LE: loop exit
PB: predicated region body
PF: predicated region fallthrough
CT: control target
= control target key end

     0   :  { %s110_s0 = inlined_call_operand.vmem [shape: f32[1,62,128], index: 0, kind: input, shape index: {}]   ;;  %s111_s1 = inlined_call_operand.vmem [shape: f32[2,31,128], index: 1, kind: output, shape index: {}]  }
   0x1   :  { %v2_v0 = vld [vmem:[%s110_s0] sm:$0xff]   ;;  %v34_v1 = vld [vmem:[%s110_s0 + $0x8] sm:$0xff]   ;;  %v36_v2 = vld [vmem:[%s110_s0 + $0x10] sm:$0xff]  }
   0x2   :  { %3 = vst [vmem:[%s111_s1] sm:$0xff] %v2_v0   ;;  %35 = vst [vmem:[%s111_s1 + $0x8] sm:$0xff] %v34_v1   ;;  %v38_v3 = vld [vmem:[%s110_s0 + $0x18] sm:$0xff]   ;;  %v41_v4 = vld [vmem:[%s110_s0 + $0x20] sm:$0xff]  }
   0x3   :  { %37 = vst [vmem:[%s111_s1 + $0x10] sm:$0xff] %v36_v2   ;;  %v43_v5 = vld [vmem:[%s110_s0 + $0x28] sm:$0xff]   ;;  %39 = vst [vmem:[%s111_s1 + $0x18] sm:$0x7f] %v38_v3   ;;  %v45_v6 = vld [vmem:[%s110_s0 + $0x30] sm:$0xff]  }
   0x4   :  { %40 = vst [vmem:[%s111_s1 + $0x19] sm:$0x80] %v38_v3   ;;  %42 = vst [vmem:[%s111_s1 + $0x21] sm:$0xff] %v41_v4   ;;  %v47_v7 = vld [vmem:[%s110_s0 + $0x38] sm:$0x3f]  }
   0x5   :  { %44 = vst [vmem:[%s111_s1 + $0x29] sm:$0xff] %v43_v5   ;;  %46 = vst [vmem:[%s111_s1 + $0x31] sm:$0xff] %v45_v6  }
   0x6   :  { %48 = vst [vmem:[%s111_s1 + $0x39] sm:$0x3f] %v47_v7  }

// kernel: xwc_avg_forward.3
= control target key start
LH: loop header
LB: loop body
LE: loop exit
PB: predicated region body
PF: predicated region fallthrough
CT: control target
= control target key end

     0   :  { %v358_v0 = vmov 0.0   ;;  %vm359_vm0 = vmmov 0   ;;  %s453_s1 = inlined_call_operand.vmem [shape: bf16[128,128], index: 1, kind: input, shape index: {}]   ;;  %s454_s3 = inlined_call_operand.vmem [shape: bf16[128,128], index: 3, kind: input, shape index: {}]   ;;  %s455_s0 = inlined_call_operand.vmem [shape: bf16[16,128], index: 0, kind: input, shape index: {}]   ;;  %s456_s2 = inlined_call_operand.vmem [shape: f32[1,128], index: 2, kind: input, shape index: {}]   ;;  %s457_s4 = inlined_call_operand.vmem [shape: f32[1,128], index: 4, kind: input, shape index: {}]   ;;  %s458_s5 = inlined_call_operand.vmem [shape: f32[16,128], index: 5, kind: output, shape index: {}]  }
   0x1   :  { %299 = vmatprep.subr.bf16.mxu0 %v358_v0  ;;  %v341_v1 = vld [vmem:[%s453_s1 + $0x38] sm:$0xff]   ;;  %315 = vmatprep.mubr.msk.bf16.mxu0 %vm359_vm0, %v358_v0  ;;  %v342_v2 = vld [vmem:[%s453_s1 + $0x30] sm:$0xff]   ;;  %v343_v3 = vld [vmem:[%s453_s1 + $0x28] sm:$0xff]  }
   0x2   :  { %319 = vmatprep.subr.bf16.mxu1 %v358_v0  ;;  %335 = vmatprep.mubr.msk.bf16.mxu1 %vm359_vm0, %v358_v0  ;;  %v350_v4 = vld [vmem:[%s454_s3 + $0x38] sm:$0xff]   ;;  %v344_v5 = vld [vmem:[%s453_s1 + $0x20] sm:$0xff]   ;;  %v351_v6 = vld [vmem:[%s454_s3 + $0x30] sm:$0xff]  }
   0x3   :  { %300 = vmatpush3.bf16.msra.mxu0 %v341_v1  ;;  %320 = vmatpush3.bf16.msra.mxu1 %v350_v4  ;;  %v345_v7 = vld [vmem:[%s453_s1 + $0x18] sm:$0xff]   ;;  %v352_v8 = vld [vmem:[%s454_s3 + $0x28] sm:$0xff]   ;;  %v346_v9 = vld [vmem:[%s453_s1 + $0x10] sm:$0xff]  }
   0x4   :  { %301 = vmatprep.subr.bf16.mxu0 %v358_v0  ;;  %321 = vmatprep.subr.bf16.mxu1 %v358_v0  ;;  %v353_v10 = vld [vmem:[%s454_s3 + $0x20] sm:$0xff]   ;;  %v347_v11 = vld [vmem:[%s453_s1 + $0x8] sm:$0xff]   ;;  %v354_v12 = vld [vmem:[%s454_s3 + $0x18] sm:$0xff]  }
   0x5   :  { %v348_v13 = vld [vmem:[%s453_s1] sm:$0xff]   ;;  %v355_v15 = vld [vmem:[%s454_s3 + $0x10] sm:$0xff]   ;;  %v356_v16 = vld [vmem:[%s454_s3 + $0x8] sm:$0xff]  }
   0x6   :  { %v349_v14 = vld [vmem:[%s455_s0] sm:$0xff]  }
   0x7   :  { %302 = vmatpush3.bf16.msra.mxu0 %v342_v2  ;;  %322 = vmatpush3.bf16.msra.mxu1 %v351_v6  ;;  %v357_v17 = vld [vmem:[%s454_s3] sm:$0xff]  }
   0x8   :  { %303 = vmatprep.subr.bf16.mxu0 %v358_v0  ;;  %323 = vmatprep.subr.bf16.mxu1 %v358_v0  ;;  %v262_v18 = vld [vmem:[%s456_s2] ss:$0 sm:$0xff] }
   0x9   :  { %v272_v28 = vld [vmem:[%s457_s4] ss:$0 sm:$0xff] }
   0xb   :  { %304 = vmatpush3.bf16.msra.mxu0 %v343_v3  ;;  %324 = vmatpush3.bf16.msra.mxu1 %v352_v8 }
   0xc   :  { %305 = vmatprep.subr.bf16.mxu0 %v358_v0  ;;  %325 = vmatprep.subr.bf16.mxu1 %v358_v0 }
   0xf   :  { %306 = vmatpush3.bf16.msra.mxu0 %v344_v5  ;;  %326 = vmatpush3.bf16.msra.mxu1 %v353_v10 }
  0x10   :  { %307 = vmatprep.subr.bf16.mxu0 %v358_v0  ;;  %327 = vmatprep.subr.bf16.mxu1 %v358_v0 }
  0x13   :  { %308 = vmatpush3.bf16.msra.mxu0 %v345_v7  ;;  %328 = vmatpush3.bf16.msra.mxu1 %v354_v12 }
  0x14   :  { %309 = vmatprep.subr.bf16.mxu0 %v358_v0  ;;  %329 = vmatprep.subr.bf16.mxu1 %v358_v0 }
  0x17   :  { %310 = vmatpush3.bf16.msra.mxu0 %v346_v9  ;;  %330 = vmatpush3.bf16.msra.mxu1 %v355_v15 }
  0x18   :  { %311 = vmatprep.subr.bf16.mxu0 %v358_v0  ;;  %331 = vmatprep.subr.bf16.mxu1 %v358_v0 }
  0x1b   :  { %312 = vmatpush3.bf16.msra.mxu0 %v347_v11  ;;  %332 = vmatpush3.bf16.msra.mxu1 %v356_v16 }
  0x1c   :  { %313 = vmatprep.subr.bf16.mxu0 %v358_v0  ;;  %333 = vmatprep.subr.bf16.mxu1 %v358_v0 }
  0x1f   :  { %314 = vmatpush3.bf16.msra.mxu0 %v348_v13  ;;  %334 = vmatpush3.bf16.msra.mxu1 %v357_v17 }
  0x22   :  { %316 = vmatmul.mubr.bf16.vlgmr.msra.gmra.mxu0 %v349_v14 }
  0xe2   :  { %v134_v19 = vpop.f32.mrf.mxu0 }
  0xe3   :  { %v135_v21 = vadd.f32 %v262_v18, %v134_v19 }
  0xe4   :  { %v317_v20 = vpop.f32.mrf.mxu0 }
  0xe5   :  { %v141_v25 = vmax.f32 %v135_v21, 0.0 }
  0xe6   :  { %v137_v22 = vpop.f32.mrf.mxu0 }
  0xe7   :  { %v138_v23 = vadd.f32 %v262_v18, %v137_v22 }
  0xe8   :  { %v318_v24 = vpop.f32.mrf.mxu0 }
  0xe9   :  { %v142_v26 = vmax.f32 %v138_v23, 0.0 }
  0xeb   :  { %v143_v27 = vpack.c.bf16 %v142_v26, %v141_v25 }
  0xed   :  { %336 = vmatmul.mubr.bf16.vlgmr.msra.gmra.mxu1 %v143_v27 }
 0x1ad   :  { %v249_v29 = vpop.f32.mrf.mxu1 }
 0x1ae   :  { %v250_v30 = vadd.f32 %v272_v28, %v249_v29 }
 0x1af   :  { %v337_v31 = vpop.f32.mrf.mxu1 }
 0x1b0   :  { %256 = vst [vmem:[%s458_s5] sm:$0xff] %v250_v30 }
 0x1b1   :  { %v252_v32 = vpop.f32.mrf.mxu1 }
 0x1b2   :  { %v253_v33 = vadd.f32 %v272_v28, %v252_v32 }
 0x1b3   :  { %v338_v34 = vpop.f32.mrf.mxu1 }
 0x1b4   :  { %257 = vst [vmem:[%s458_s5 + $0x8] sm:$0xff] %v253_v33 }

// kernel: xwc_avg_forward.2
= control target key start
LH: loop header
LB: loop body
LE: loop exit
PB: predicated region body
PF: predicated region fallthrough
CT: control target
= control target key end

     0   :  { %s2147_s25 = smov 0   ;;  %s2149_s26 = smov 0   ;;  %s2369_s0 = inlined_call_operand.vmem [shape: bf16[64,128], index: 0, kind: input, shape index: {}]   ;;  %s2370_s1 = inlined_call_operand.vmem [shape: bf16[2,128,128], index: 1, kind: input, shape index: {}]   ;;  %s2371_s2 = inlined_call_operand.vmem [shape: f32[2,1,128], index: 2, kind: input, shape index: {}]   ;;  %s2372_s3 = inlined_call_operand.vmem [shape: f32[2,1,128], index: 3, kind: input, shape index: {}]   ;;  %s2373_s4 = inlined_call_operand.vmem [shape: f32[2,1,128], index: 4, kind: input, shape index: {}]   ;;  %s2374_s5 = inlined_call_operand.vmem [shape: bf16[2,128,128], index: 5, kind: input, shape index: {}]   ;;  %s2375_s6 = inlined_call_operand.vmem [shape: f32[2,1,128], index: 6, kind: input, shape index: {}]   ;;  %s2376_s7 = inlined_call_operand.vmem [shape: bf16[2,128,256], index: 7, kind: input, shape index: {}]   ;;  %s2377_s8 = inlined_call_operand.vmem [shape: f32[2,1,256], index: 8, kind: input, shape index: {}]   ;;  %s2378_s9 = inlined_call_operand.vmem [shape: bf16[2,256,128], index: 9, kind: input, shape index: {}]   ;;  %s2379_s10 = inlined_call_operand.vmem [shape: f32[2,1,128], index: 10, kind: input, shape index: {}]   ;;  %s2380_s11 = inlined_call_operand.vmem [shape: f32[2,1,128], index: 11, kind: input, shape index: {}]   ;;  %s2381_s12 = inlined_call_operand.vmem [shape: f32[2,1,128], index: 12, kind: input, shape index: {}]   ;;  %s2382_s13 = inlined_call_operand.vmem [shape: f32[2,64,128], index: 13, kind: output, shape index: {}]  }
   0x1   :  { %2383 = sst [smem:[#allocation2_spill]] %s2369_s0  ;;  %s2151_s27 = smov 0  }
   0x2   :  { %2384 = sst [smem:[#allocation3_spill]] %s2370_s1  ;;  %s2153_s28 = smov 0  }
   0x3   :  { %s2155_s29 = smov 0  }
   0x4 LB: > { %s32_s30 = sadd.s32 1, %s2066_s27  ;;  %s35_s14 = sadd.s32 1, %s2070_s28  ;;  %s2074_s29 = sphi %s2155_s29, %s23_s29   ;;  %s2070_s28 = sphi %s2153_s28, %s2390_s28   ;;  %s2066_s27 = sphi %s2151_s27, %s2389_s27   ;;  %s2062_s26 = sphi %s2149_s26, %s2388_s26   ;;  %s2058_s25 = sphi %s2147_s25, %s2387_s25  }
   0x5   : > { %p33_p0 = scmp.ge.s32.totalorder %s32_s30, 2  ;;  %p1731_p1 = scmp.ge.s32.totalorder %s2074_s29, 1 }
   0x6   : > { %p507_p2 = scmp.lt.s32.totalorder %s2074_s29, 5 }
   0x7   : > { %s2392_s30 = smov (%p33_p0, %s32_s30), 0  ;;  %s2394_s14 = smov (!%p33_p0, %s35_s14), %s2070_s28 }
   0x8   : > { %p508_p3 = pnand %p1731_p1, %p507_p2  ;;  %p37_p4 = scmp.ge.s32.totalorder %s2394_s14, 2 }
   0x9   : > { %p606_p5 = scmp.lt.s32.totalorder (!%p508_p3), %s2062_s26, 1  ;;  %s1732_s15 = sshll.u32 (!%p508_p3), %s2058_s25, 2 }
   0xa   : > { %s2396_s14 = smov (%p37_p4, %s2394_s14), 0  ;;  %511 = sbr.rel (%p508_p3) target bundleno = 1551 (0x60f), region = 72 }
   0xb   : > { %p601_p6 = scmp.lt.s32.totalorder (!%p508_p3), %s1732_s15, 7  ;;  %s2385_s1 = sld [smem:[#allocation3_spill]] (!%p508_p3) }
   0xc   : > { %s2386_s0 = sld [smem:[#allocation2_spill]] (!%p508_p3) }
   0xf   : > { %s2398_s26 = smov (!%p606_p5, %s2062_s26), 1  ;;  %s2400_s15 = smov (!%p601_p6, %s1732_s15), 7 }
  0x10   : > { %s1805_s16 = sshll.u32 %s2398_s26, 6  ;;  %s1733_s20 = sshll.u32 %s2400_s15, 2 }
  0x11   : > { %s610_s19 = scalar_lea.vmem %s2385_s1, %s1805_s16  ;;  %s613_s17 = scalar_lea.vmem %s2371_s2, %s2398_s26 }
  0x12   : > { %v1938_v0 = vld [vmem:[%s610_s19 + $0x38] sm:$0xff]   ;;  %v1939_v1 = vld [vmem:[%s610_s19 + $0x30] sm:$0xff]   ;;  %v1940_v2 = vld [vmem:[%s610_s19 + $0x28] sm:$0xff]   ;;  %s604_s23 = scalar_lea.vmem %s2386_s0, %s1733_s20  ;;  %s624_s20 = scalar_lea.vmem %s2374_s5, %s1805_s16 }
  0x13   : > { %1857 = vmatprep.subr.bf16.mxu0 %v1938_v0  ;;  %v1941_v3 = vld [vmem:[%s610_s19 + $0x20] sm:$0xff]   ;;  %v1942_v5 = vld [vmem:[%s610_s19 + $0x18] sm:$0xff]   ;;  %v1943_v6 = vld [vmem:[%s610_s19 + $0x10] sm:$0xff]   ;;  %s1807_s16 = sshll.u32 %s2398_s26, 7  ;;  %s619_s22 = scalar_lea.vmem %s2373_s4, %s2398_s26 }
  0x14   : > { %1858 = vmatpush3.bf16.msra.mxu0 %v1938_v0  ;;  %v1946_v4 = vld [vmem:[%s604_s23] sm:$0xff]   ;;  %v1944_v7 = vld [vmem:[%s610_s19 + $0x8] sm:$0xff]   ;;  %s627_s18 = scalar_lea.vmem %s2375_s6, %s2398_s26  ;;  %s1744_s24 = sshll.u32 %s2398_s26, 3 }
  0x15   : > { %1859 = vmatprep.subr.bf16.mxu0 %v1939_v1  ;;  %1873 = vmatprep.mubr.bf16.mxu0 %v1946_v4  ;;  %v1945_v8 = vld [vmem:[%s610_s19] sm:$0xff]   ;;  %v1947_v9 = vld [vmem:[%s604_s23 + $0x8] sm:$0xff]   ;;  %s2220_s23 = scalar_lea.vmem %s2376_s7, %s1807_s16  ;;  %s657_s19 = sadd.s32 %s1744_s24, %s2400_s15 }
  0x16   : > { %v1746_v10 = vld [vmem:[%s613_s17] ss:$0 sm:$0xff]  ;;  %s2232_s17 = scalar_lea.vmem %s2378_s9, %s1807_s16  ;;  %s1745_s21 = sshll.u32 %s657_s19, 3 }
  0x17   : > { %s659_s1 = scalar_lea.vmem %s2382_s13, %s1745_s21 }
  0x18   : > { %1860 = vmatpush3.bf16.msra.mxu0 %v1939_v1 }
  0x19   : > { %1861 = vmatprep.subr.bf16.mxu0 %v1940_v2 }
  0x1c   : > { %1862 = vmatpush3.bf16.msra.mxu0 %v1940_v2 }
  0x1d   : > { %1863 = vmatprep.subr.bf16.mxu0 %v1941_v3 }
  0x20   : > { %1864 = vmatpush3.bf16.msra.mxu0 %v1941_v3 }
  0x21   : > { %1865 = vmatprep.subr.bf16.mxu0 %v1942_v5 }
  0x24   : > { %1866 = vmatpush3.bf16.msra.mxu0 %v1942_v5 }
  0x25   : > { %1867 = vmatprep.subr.bf16.mxu0 %v1943_v6 }
  0x28   : > { %1868 = vmatpush3.bf16.msra.mxu0 %v1943_v6 }
  0x29   : > { %1869 = vmatprep.subr.bf16.mxu0 %v1944_v7 }
  0x2c   : > { %1870 = vmatpush3.bf16.msra.mxu0 %v1944_v7  ;;  %v1948_v7 = vld [vmem:[%s624_s20 + $0x38] sm:$0xff]  }
  0x2d   : > { %1871 = vmatprep.subr.bf16.mxu0 %v1945_v8  ;;  %1877 = vmatprep.subr.bf16.mxu1 %v1948_v7 }
  0x2e   : > { %1878 = vmatpush3.bf16.msra.mxu1 %v1948_v7 }
  0x30   : > { %1872 = vmatpush3.bf16.msra.mxu0 %v1945_v8  ;;  %v1949_v8 = vld [vmem:[%s624_s20 + $0x30] sm:$0xff]  }
  0x31   : > { %1879 = vmatprep.subr.bf16.mxu1 %v1949_v8 }
  0x32   : > { %1880 = vmatpush3.bf16.msra.mxu1 %v1949_v8 }
  0x33   : > { %1874 = vmatmul.mubr.bf16.vlgmr.msra.gmra.mxu0 %v1947_v9  ;;  %v1950_v9 = vld [vmem:[%s624_s20 + $0x28] sm:$0xff]  }
  0x34   : > { %1881 = vmatprep.subr.bf16.mxu1 %v1950_v9 }
  0x36   : > { %1882 = vmatpush3.bf16.msra.mxu1 %v1950_v9 }
  0xf3   : > { %v1875_v11 = vpop.f32.mrf.mxu0 }
  0xf4   : > { %v792_v12 = vadd.f32 %v1875_v11, %v1746_v10  ;;  %v1952_v11 = vld [vmem:[%s624_s20 + $0x18] sm:$0xff]  }
  0xf5   : > { %v783_v13 = vpop.f32.mrf.mxu0 }
  0xf6   : > { %v800_v14 = vmul.f32 %v792_v12, %v792_v12  ;;  %v784_v15 = vadd.f32 %v1746_v10, %v783_v13  ;;  %v1954_v13 = vld [vmem:[%s624_s20 + $0x8] sm:$0xff]  }
  0xf7   : > { %v1876_v16 = vpop.f32.mrf.mxu0 }
  0xf8   : > { %v804_v17 = vmul.f32 %v800_v14, %v792_v12  ;;  %v798_v18 = vmul.f32 %v784_v15, %v784_v15  ;;  %v795_v19 = vadd.f32 %v1876_v16, %v1746_v10  ;;  %v1955_v14 = vld [vmem:[%s624_s20] sm:$0xff]   ;;  %v1958_v16 = vld [vmem:[%s2220_s23 + $0x74] ss:$8 sps:$4 sm:$0xff]  }
  0xf9   : > { %v786_v20 = vpop.f32.mrf.mxu0  ;;  %1133 = vmatprep.subr.bf16.mxu0 %v1958_v16  ;;  %v1985_v16 = vld [vmem:[%s2232_s17 + $0x28] sm:$0xff]  }
  0xfa   : > { %v808_v21 = vmul.f32 0.044715, %v804_v17  ;;  %v802_v22 = vmul.f32 %v798_v18, %v784_v15  ;;  %v801_v23 = vmul.f32 %v795_v19, %v795_v19  ;;  %v787_v24 = vadd.f32 %v1746_v10, %v786_v20  ;;  %v1951_v10 = vld [vmem:[%s624_s20 + $0x20] sm:$0xff]   ;;  %v1962_v20 = vld [vmem:[%s2220_s23 + $0x50] ss:$8 sps:$4 sm:$0xff]  }
  0xfb   : > { %1883 = vmatprep.subr.bf16.mxu1 %v1951_v10  ;;  %v1961_v17 = vld [vmem:[%s2220_s23 + $0x64] ss:$8 sps:$4 sm:$0xff]   ;;  %v1959_v18 = vld [vmem:[%s2220_s23 + $0x60] ss:$8 sps:$4 sm:$0xff]  }
  0xfc   : > { %v806_v25 = vmul.f32 0.044715, %v802_v22  ;;  %v805_v26 = vmul.f32 %v801_v23, %v795_v19  ;;  %v799_v27 = vmul.f32 %v787_v24, %v787_v24  ;;  %v812_v28 = vadd.f32 %v808_v21, %v792_v12  ;;  %1884 = vmatpush3.bf16.msra.mxu1 %v1951_v10  ;;  %v1967_v21 = vld [vmem:[%s2220_s23 + $0x44] ss:$8 sps:$4 sm:$0xff]   ;;  %v1965_v22 = vld [vmem:[%s2220_s23 + $0x40] ss:$8 sps:$4 sm:$0xff]  }
  0xfd   : > { %1885 = vmatprep.subr.bf16.mxu1 %v1952_v11  ;;  %v1970_v23 = vld [vmem:[%s2220_s23 + $0x34] ss:$8 sps:$4 sm:$0xff]  }
  0xfe   : > { %v809_v29 = vmul.f32 0.044715, %v805_v26  ;;  %v803_v30 = vmul.f32 %v799_v27, %v787_v24  ;;  %v816_v31 = vmul.f32 0.7978846, %v812_v28  ;;  %v810_v32 = vadd.f32 %v806_v25, %v784_v15  ;;  %v1973_v25 = vld [vmem:[%s2220_s23 + $0x24] ss:$8 sps:$4 sm:$0xff]  }
  0xff   : > { %v1971_v26 = vld [vmem:[%s2220_s23 + $0x20] ss:$8 sps:$4 sm:$0xff]  }
 0x100   : > { %v807_v33 = vmul.f32 0.044715, %v803_v30  ;;  %1996 = vtanh.f32 %v816_v31  ;;  %v814_v34 = vmul.f32 0.7978846, %v810_v32  ;;  %v813_v35 = vadd.f32 %v809_v29, %v795_v19  ;;  %1886 = vmatpush3.bf16.msra.mxu1 %v1952_v11  ;;  %v1980_v11 = vld [vmem:[%s2232_s17 + $0x78] sm:$0xff]  }
 0x102   : > { %1998 = vtanh.f32 %v814_v34  ;;  %v817_v36 = vmul.f32 0.7978846, %v813_v35  ;;  %v811_v37 = vadd.f32 %v807_v33, %v787_v24 }
 0x104   : > { %2000 = vtanh.f32 %v817_v36  ;;  %v815_v38 = vmul.f32 0.7978846, %v811_v37 }
 0x106   : > { %2002 = vtanh.f32 %v815_v38 }
 0x10d   : > { %v1997_v39 = vpop.eup %1996 }
 0x10e   : > { %v824_v40 = vadd.f32 1.0, %v1997_v39 }
 0x10f   : > { %v1999_v41 = vpop.eup %1998 }
 0x110   : > { %v828_v42 = vmul.f32 0.5, %v824_v40  ;;  %v822_v43 = vadd.f32 1.0, %v1999_v41 }
 0x111   : > { %v2001_v44 = vpop.eup %2000 }
 0x112   : > { %v832_v45 = vmul.f32 %v828_v42, %v792_v12  ;;  %v826_v46 = vmul.f32 0.5, %v822_v43  ;;  %v825_v47 = vadd.f32 1.0, %v2001_v44  ;;  %v1953_v12 = vld [vmem:[%s624_s20 + $0x10] sm:$0xff]   ;;  %s616_s20 = scalar_lea.vmem %s2372_s3, %s2398_s26 }
 0x113   : > { %v2003_v48 = vpop.eup %2002  ;;  %1887 = vmatprep.subr.bf16.mxu1 %v1953_v12  ;;  %v1757_v41 = vld [vmem:[%s616_s20] ss:$0 sm:$0xff] }
 0x114   : > { %840 = vadd.xlane.f32.xlu1 %v832_v45  ;;  %v830_v49 = vmul.f32 %v826_v46, %v784_v15  ;;  %v829_v50 = vmul.f32 0.5, %v825_v47  ;;  %v823_v51 = vadd.f32 1.0, %v2003_v48  ;;  %1888 = vmatpush3.bf16.msra.mxu1 %v1953_v12  ;;  %v1956_v15 = vld [vmem:[%s2220_s23 + $0x70] ss:$8 sps:$4 sm:$0xff]   ;;  %v1758_v46 = vld [vmem:[%s619_s22] ss:$0 sm:$0xff]  ;;  %s644_s22 = scalar_lea.vmem %s2379_s10, %s2398_s26 }
 0x115   : > { %1889 = vmatprep.subr.bf16.mxu1 %v1954_v13  ;;  %1134 = vmatpush1.bf16.msra.mxu0 %v1956_v15  ;;  %v1981_v12 = vld [vmem:[%s2232_s17 + $0x38] sm:$0xff]   ;;  %v1984_v15 = vld [vmem:[%s2232_s17 + $0x68] sm:$0xff]  }
 0x116   : > { %836 = vadd.xlane.f32.xlu0 %v830_v49  ;;  %v833_v52 = vmul.f32 %v829_v50, %v795_v19  ;;  %v827_v53 = vmul.f32 0.5, %v823_v51  ;;  %1135 = vmatprep.subr.bf16.mxu0 %v1961_v17  ;;  %v1964_v19 = vld [vmem:[%s2220_s23 + $0x54] ss:$8 sps:$4 sm:$0xff]   ;;  %v1986_v17 = vld [vmem:[%s2232_s17 + $0x60] sm:$0xff]  }
 0x118   : > { %842 = vadd.xlane.f32.xlu1 %v833_v52  ;;  %v831_v54 = vmul.f32 %v827_v53, %v787_v24  ;;  %1890 = vmatpush3.bf16.msra.mxu1 %v1954_v13  ;;  %v1968_v24 = vld [vmem:[%s2220_s23 + $0x30] ss:$8 sps:$4 sm:$0xff]  }
 0x119   : > { %1891 = vmatprep.subr.bf16.mxu1 %v1955_v14  ;;  %1136 = vmatpush1.bf16.msra.mxu0 %v1959_v18  ;;  %v1982_v13 = vld [vmem:[%s2232_s17 + $0x70] sm:$0xff]   ;;  %v1987_v18 = vld [vmem:[%s2232_s17 + $0x20] sm:$0xff]  }
 0x11a   : > { %838 = vadd.xlane.f32.xlu0 %v831_v54  ;;  %1137 = vmatprep.subr.bf16.mxu0 %v1964_v19  ;;  %v1988_v19 = vld [vmem:[%s2232_s17 + $0x58] sm:$0xff]  }
 0x11c   : > { %1892 = vmatpush3.bf16.msra.mxu1 %v1955_v14  ;;  %v1983_v14 = vld [vmem:[%s2232_s17 + $0x30] sm:$0xff]  }
 0x11d   : > { %1138 = vmatpush1.bf16.msra.mxu0 %v1962_v20  ;;  %1829 = vmatprep.subr.bf16.mxu1 %v1980_v11  ;;  %v1989_v20 = vld [vmem:[%s2232_s17 + $0x18] sm:$0xff]  }
 0x11e   : > { %1139 = vmatprep.subr.bf16.mxu0 %v1967_v21  ;;  %v1990_v21 = vld [vmem:[%s2232_s17 + $0x50] sm:$0xff]  }
 0x121   : > { %1140 = vmatpush1.bf16.msra.mxu0 %v1965_v22  ;;  %v1991_v22 = vld [vmem:[%s2232_s17 + $0x10] sm:$0xff]  }
 0x122   : > { %1141 = vmatprep.subr.bf16.mxu0 %v1970_v23  ;;  %v1992_v23 = vld [vmem:[%s2232_s17 + $0x48] sm:$0xff]  }
 0x125   : > { %1142 = vmatpush1.bf16.msra.mxu0 %v1968_v24  ;;  %v1993_v24 = vld [vmem:[%s2232_s17 + $0x8] sm:$0xff]  }
 0x126   : > { %1143 = vmatprep.subr.bf16.mxu0 %v1973_v25  ;;  %v1994_v25 = vld [vmem:[%s2232_s17 + $0x40] sm:$0xff]  }
 0x129   : > { %1144 = vmatpush1.bf16.msra.mxu0 %v1971_v26  ;;  %v1995_v26 = vld [vmem:[%s2232_s17] sm:$0xff]   ;;  %s650_s17 = scalar_lea.vmem %s2381_s12, %s2398_s26 }
 0x19d   : > { %v841_v55 = vpop.xlane.xlu1 %840 }
 0x19e   : > { %v847_v57 = vmul.f32 0.0078125, %v841_v55 }
 0x19f   : > { %v837_v56 = vpop.xlane.xlu0 %836 }
 0x1a0   : > { %v845_v58 = vmul.f32 0.0078125, %v837_v56  ;;  %v2197_v62 = vsub.f32 %v832_v45, %v847_v57 }
 0x1a1   : > { %v843_v59 = vpop.xlane.xlu1 %842 }
 0x1a2   : > { %v2195_v60 = vsub.f32 %v830_v49, %v845_v58  ;;  %v848_v63 = vmul.f32 0.0078125, %v843_v59  ;;  %v855_v4 = vmul.f32 %v2197_v62, %v2197_v62  ;;  %v1976_v59 = vld [vmem:[%s2220_s23 + $0x14] ss:$8 sps:$4 sm:$0xff]  }
 0x1a3   : > { %v839_v61 = vpop.xlane.xlu0 %838  ;;  %1145 = vmatprep.subr.bf16.mxu0 %v1976_v59 }
 0x1a4   : > { %v846_v0 = vmul.f32 0.0078125, %v839_v61  ;;  %v853_v1 = vmul.f32 %v2195_v60, %v2195_v60  ;;  %v2203_v3 = vsub.f32 %v833_v52, %v848_v63  ;;  %v1979_v61 = vld [vmem:[%s2220_s23 + $0x4] ss:$8 sps:$4 sm:$0xff]   ;;  %v2076_v63 = vmov 0  }
 0x1a5   : > { %1165 = vmatprep.mubr.bf16.mxu0 %v2076_v63 }
 0x1a6   : > { %v2201_v2 = vsub.f32 %v831_v54, %v846_v0  ;;  %857 = vadd.xlane.f32.xlu0 %v853_v1  ;;  %v856_v6 = vmul.f32 %v2203_v3, %v2203_v3 }
 0x1a8   : > { %v854_v5 = vmul.f32 %v2201_v2, %v2201_v2 }
 0x1aa   : > { %861 = vadd.xlane.f32.xlu0 %v855_v4  ;;  %859 = vadd.xlane.f32.xlu1 %v854_v5 }
 0x1ae   : > { %863 = vadd.xlane.f32.xlu1 %v856_v6 }
 0x22f   : > { %v858_v27 = vpop.xlane.xlu0 %857 }
 0x230   : > { %v865_v28 = vmul.f32 0.0078125, %v858_v27  ;;  %v1043_v27 = vlaneseq }
 0x232   : > { %v869_v29 = vadd.f32 1e-05, %v865_v28  ;;  %v1044_v28 = vshrl.u32 %v1043_v27, 7 }
 0x233   : > { %v860_v30 = vpop.xlane.xlu1 %859  ;;  %v862_v31 = vpop.xlane.xlu0 %861 }
 0x234   : > { %2004 = vrsqrt.f32 %v869_v29  ;;  %v866_v32 = vmul.f32 0.0078125, %v860_v30  ;;  %v867_v33 = vmul.f32 0.0078125, %v862_v31  ;;  %v1045_v29 = vsub.s32 0, %v1044_v28 }
 0x235   : > { %v1049_v31 = vsub.s32 1, %v1044_v28 }
 0x236   : > { %v870_v34 = vadd.f32 1e-05, %v866_v32  ;;  %v871_v35 = vadd.f32 1e-05, %v867_v33 }
 0x237   : > { %v864_v36 = vpop.xlane.xlu1 %863 }
 0x238   : > { %2006 = vrsqrt.f32 %v870_v34  ;;  %v868_v37 = vmul.f32 0.0078125, %v864_v36 }
 0x239   : > { %2008 = vrsqrt.f32 %v871_v35 }
 0x23a   : > { %v872_v38 = vadd.f32 1e-05, %v868_v37 }
 0x23c   : > { %2010 = vrsqrt.f32 %v872_v38 }
 0x241   : > { %v2005_v39 = vpop.eup %2004 }
 0x242   : > { %v877_v40 = vmul.f32 %v2005_v39, %v2195_v60  ;;  %v1974_v60 = vld [vmem:[%s2220_s23 + $0x10] ss:$8 sps:$4 sm:$0xff]  }
 0x243   : > { %1146 = vmatpush1.bf16.msra.mxu0 %v1974_v60 }
 0x244   : > { %v887_v45 = vmul.f32 %v1757_v41, %v877_v40  ;;  %1147 = vmatprep.subr.bf16.mxu0 %v1979_v61 }
 0x245   : > { %v2007_v42 = vpop.eup %2006 }
 0x246   : > { %v2009_v43 = vpop.eup %2008  ;;  %v878_v44 = vmul.f32 %v2007_v42, %v2201_v2  ;;  %v897_v50 = vadd.f32 %v1758_v46, %v887_v45 }
 0x247   : > { %v879_v47 = vmul.f32 %v2009_v43, %v2197_v62  ;;  %v1977_v62 = vld [vmem:[%s2220_s23] ss:$8 sps:$4 sm:$0xff]   ;;  %s1740_s23 = sshll.u32 %s2398_s26, 1 }
 0x248   : > { %v888_v48 = vmul.f32 %v1757_v41, %v878_v44  ;;  %1148 = vmatpush1.bf16.msra.mxu0 %v1977_v62  ;;  %s636_s16 = scalar_lea.vmem %s2377_s8, %s1740_s23  ;;  %s647_s23 = scalar_lea.vmem %s2380_s11, %s2398_s26 }
 0x249   : > { %v2011_v49 = vpop.eup %2010  ;;  %v889_v53 = vmul.f32 %v1757_v41, %v879_v47  ;;  %v1041_v30 = vld [vmem:[%s636_s16] sm:$0x3] }
 0x24a   : > { %v898_v51 = vadd.f32 %v1758_v46, %v888_v48  ;;  %v880_v52 = vmul.f32 %v2011_v49, %v2203_v3  ;;  %v1759_v3 = vld [vmem:[%s627_s18] ss:$0 sm:$0xff]  ;;  %v1046_v32 = vrot.slane %v1041_v30, %v1045_v29  ;;  %v1050_v33 = vrot.slane %v1041_v30, %v1049_v31 }
 0x24b   : > { %v899_v56 = vadd.f32 %v1758_v46, %v889_v53 }
 0x24c   : > { %v901_v54 = vpack.c.bf16 %v898_v51, %v897_v50  ;;  %v890_v55 = vmul.f32 %v1757_v41, %v880_v52 }
 0x24e   : > { %1893 = vmatprep.mubr.bf16.mxu1 %v901_v54  ;;  %v900_v57 = vadd.f32 %v1758_v46, %v890_v55 }
 0x250   : > { %v902_v58 = vpack.c.bf16 %v900_v57, %v899_v56 }
 0x252   : > { %1894 = vmatmul.mubr.bf16.vlgmr.msra.gmra.mxu1 %v902_v58 }
 0x253   : > { %1830 = vmatpush3.bf16.msra.mxu1 %v1981_v12 }
 0x254   : > { %1831 = vmatprep.subr.bf16.mxu1 %v1982_v13 }
 0x257   : > { %1832 = vmatpush3.bf16.msra.mxu1 %v1983_v14 }
 0x258   : > { %1833 = vmatprep.subr.bf16.mxu1 %v1984_v15 }
 0x25b   : > { %1834 = vmatpush3.bf16.msra.mxu1 %v1985_v16 }
 0x25c   : > { %1835 = vmatprep.subr.bf16.mxu1 %v1986_v17 }
 0x25f   : > { %1836 = vmatpush3.bf16.msra.mxu1 %v1987_v18 }
 0x260   : > { %1837 = vmatprep.subr.bf16.mxu1 %v1988_v19 }
 0x263   : > { %1838 = vmatpush3.bf16.msra.mxu1 %v1989_v20 }
 0x264   : > { %1839 = vmatprep.subr.bf16.mxu1 %v1990_v21 }
 0x267   : > { %1840 = vmatpush3.bf16.msra.mxu1 %v1991_v22 }
 0x268   : > { %1841 = vmatprep.subr.bf16.mxu1 %v1992_v23 }
 0x26b   : > { %1842 = vmatpush3.bf16.msra.mxu1 %v1993_v24 }
 0x26c   : > { %1843 = vmatprep.subr.bf16.mxu1 %v1994_v25 }
 0x26f   : > { %1844 = vmatpush3.bf16.msra.mxu1 %v1995_v26 }
 0x312   : > { %v1895_v0 = vpop.f32.mrf.mxu1 }
 0x313   : > { %v2267_v9 = vadd.f32 %v1895_v0, %v1759_v3 }
 0x314   : > { %v1008_v1 = vpop.f32.mrf.mxu1 }
 0x315   : > { %v2259_v5 = vadd.f32 %v1759_v3, %v1008_v1 }
 0x316   : > { %v1896_v2 = vpop.f32.mrf.mxu1 }
 0x317   : > { %v2265_v8 = vadd.f32 %v1896_v2, %v1759_v3 }
 0x318   : > { %v1011_v4 = vpop.f32.mrf.mxu1 }
 0x319   : > { %v2261_v6 = vadd.f32 %v1759_v3, %v1011_v4  ;;  %v1024_v10 = vpack.c.bf16 %v2265_v8, %v2267_v9 }
 0x31b   : > { %v1023_v7 = vpack.c.bf16 %v2261_v6, %v2259_v5 }
 0x31d   : > { %1166 = vmatmul.mubr.bf16.vlgmr.msra.gmra.mxu0 %v1023_v7 }
 0x31e   : > { %1175 = vmatprep.mubr.bf16.mxu0 %v2076_v63 }
 0x325   : > { %1176 = vmatmul.mubr.bf16.gmra.mxu0 %v1024_v10 }
 0x3dd   : > { %v1167_v34 = vpop.f32.mrf.mxu0 }
 0x3de   : > { %v2291_v35 = vadd.f32 %v1167_v34, %v1046_v32 }
 0x3df   : > { %v1169_v36 = vpop.f32.mrf.mxu0 }
 0x3e0   : > { %v1186_v37 = vmul.f32 %v2291_v35, %v2291_v35  ;;  %v2295_v38 = vadd.f32 %v1169_v36, %v1050_v33 }
 0x3e1   : > { %v1171_v39 = vpop.f32.mrf.mxu0 }
 0x3e2   : > { %v1194_v40 = vmul.f32 %v1186_v37, %v2291_v35  ;;  %v1187_v41 = vmul.f32 %v2295_v38, %v2295_v38  ;;  %v2300_v42 = vadd.f32 %v1171_v39, %v1046_v32 }
 0x3e3   : > { %v1173_v43 = vpop.f32.mrf.mxu0 }
 0x3e4   : > { %v1202_v44 = vmul.f32 0.044715, %v1194_v40  ;;  %v1195_v45 = vmul.f32 %v1187_v41, %v2295_v38  ;;  %v1188_v46 = vmul.f32 %v2300_v42, %v2300_v42  ;;  %v2305_v47 = vadd.f32 %v1173_v43, %v1050_v33 }
 0x3e5   : > { %v1177_v48 = vpop.f32.mrf.mxu0 }
 0x3e6   : > { %v1210_v49 = vadd.f32 %v1202_v44, %v2291_v35  ;;  %v1203_v50 = vmul.f32 0.044715, %v1195_v45  ;;  %v1196_v51 = vmul.f32 %v1188_v46, %v2300_v42  ;;  %v1189_v52 = vmul.f32 %v2305_v47, %v2305_v47 }
 0x3e7   : > { %v2311_v53 = vadd.f32 %v1177_v48, %v1046_v32  ;;  %v1179_v54 = vpop.f32.mrf.mxu0 }
 0x3e8   : > { %v1218_v55 = vmul.f32 0.7978846, %v1210_v49  ;;  %v1211_v56 = vadd.f32 %v1203_v50, %v2295_v38  ;;  %v1204_v57 = vmul.f32 0.044715, %v1196_v51  ;;  %v1197_v58 = vmul.f32 %v1189_v52, %v2305_v47 }
 0x3e9   : > { %v1190_v59 = vmul.f32 %v2311_v53, %v2311_v53  ;;  %v2317_v60 = vadd.f32 %v1179_v54, %v1050_v33  ;;  %v1181_v61 = vpop.f32.mrf.mxu0 }
 0x3ea   : > { %v1219_v62 = vmul.f32 0.7978846, %v1211_v56  ;;  %v1212_v63 = vadd.f32 %v1204_v57, %v2300_v42  ;;  %v1205_v0 = vmul.f32 0.044715, %v1197_v58  ;;  %2012 = vtanh.f32 %v1218_v55 }
 0x3eb   : > { %v1198_v1 = vmul.f32 %v1190_v59, %v2311_v53  ;;  %v1191_v2 = vmul.f32 %v2317_v60, %v2317_v60  ;;  %v1182_v3 = vadd.f32 %v1181_v61, %v1046_v32  ;;  %v1183_v4 = vpop.f32.mrf.mxu0 }
 0x3ec   : > { %2014 = vtanh.f32 %v1219_v62  ;;  %v1220_v7 = vmul.f32 0.7978846, %v1212_v63  ;;  %v1213_v10 = vadd.f32 %v1205_v0, %v2305_v47  ;;  %v1184_v11 = vadd.f32 %v1183_v4, %v1050_v33 }
 0x3ed   : > { %v1206_v12 = vmul.f32 0.044715, %v1198_v1  ;;  %v1199_v13 = vmul.f32 %v1191_v2, %v2317_v60  ;;  %v1192_v14 = vmul.f32 %v1182_v3, %v1182_v3 }
 0x3ee   : > { %2016 = vtanh.f32 %v1220_v7  ;;  %v1221_v15 = vmul.f32 0.7978846, %v1213_v10  ;;  %v1193_v16 = vmul.f32 %v1184_v11, %v1184_v11  ;;  %v1784_v10 = vld [vmem:[%s644_s22] ss:$0 sm:$0xff] }
 0x3ef   : > { %v1214_v17 = vadd.f32 %v1206_v12, %v2311_v53  ;;  %v1207_v18 = vmul.f32 0.044715, %v1199_v13  ;;  %v1200_v19 = vmul.f32 %v1192_v14, %v1182_v3 }
 0x3f0   : > { %2018 = vtanh.f32 %v1221_v15  ;;  %v1201_v20 = vmul.f32 %v1193_v16, %v1184_v11 }
 0x3f1   : > { %v1222_v21 = vmul.f32 0.7978846, %v1214_v17  ;;  %v1215_v22 = vadd.f32 %v1207_v18, %v2317_v60  ;;  %v1208_v23 = vmul.f32 0.044715, %v1200_v19 }
 0x3f2   : > { %v1209_v24 = vmul.f32 0.044715, %v1201_v20 }
 0x3f3   : > { %2020 = vtanh.f32 %v1222_v21  ;;  %v1223_v25 = vmul.f32 0.7978846, %v1215_v22  ;;  %v1216_v26 = vadd.f32 %v1208_v23, %v1182_v3 }
 0x3f4   : > { %v1217_v27 = vadd.f32 %v1209_v24, %v1184_v11 }
 0x3f5   : > { %2022 = vtanh.f32 %v1223_v25  ;;  %v1224_v28 = vmul.f32 0.7978846, %v1216_v26 }
 0x3f6   : > { %v1225_v29 = vmul.f32 0.7978846, %v1217_v27 }
 0x3f7   : > { %2024 = vtanh.f32 %v1224_v28  ;;  %v2013_v30 = vpop.eup %2012 }
 0x3f8   : > { %2026 = vtanh.f32 %v1225_v29  ;;  %v1234_v34 = vadd.f32 1.0, %v2013_v30 }
 0x3f9   : > { %v2015_v31 = vpop.eup %2014 }
 0x3fa   : > { %v1235_v32 = vadd.f32 1.0, %v2015_v31  ;;  %v1242_v43 = vmul.f32 0.5, %v1234_v34 }
 0x3fb   : > { %v2017_v33 = vpop.eup %2016 }
 0x3fc   : > { %v1236_v36 = vadd.f32 1.0, %v2017_v33  ;;  %v1243_v41 = vmul.f32 0.5, %v1235_v32  ;;  %v1250_v51 = vmul.f32 %v1242_v43, %v2291_v35 }
 0x3fd   : > { %v2019_v37 = vpop.eup %2018 }
 0x3fe   : > { %v1244_v39 = vmul.f32 0.5, %v1236_v36  ;;  %v1237_v40 = vadd.f32 1.0, %v2019_v37  ;;  %v1251_v49 = vmul.f32 %v1243_v41, %v2295_v38 }
 0x400   : > { %v2021_v44 = vpop.eup %2020  ;;  %v1245_v45 = vmul.f32 0.5, %v1237_v40  ;;  %v1252_v46 = vmul.f32 %v1244_v39, %v2300_v42 }
 0x401   : > { %v1238_v54 = vadd.f32 1.0, %v2021_v44 }
 0x402   : > { %v2023_v48 = vpop.eup %2022  ;;  %v1253_v50 = vmul.f32 %v1245_v45, %v2305_v47  ;;  %v1258_v58 = vpack.c.bf16 %v1252_v46, %v1250_v51 }
 0x403   : > { %v1239_v52 = vadd.f32 1.0, %v2023_v48  ;;  %v1246_v42 = vmul.f32 0.5, %v1238_v54 }
 0x404   : > { %v2025_v55 = vpop.eup %2024  ;;  %v1259_v56 = vpack.c.bf16 %v1253_v50, %v1251_v49 }
 0x405   : > { %v2027_v57 = vpop.eup %2026  ;;  %v1240_v59 = vadd.f32 1.0, %v2025_v55  ;;  %v1247_v62 = vmul.f32 0.5, %v1239_v52  ;;  %v1254_v35 = vmul.f32 %v1246_v42, %v2311_v53 }
 0x406   : > { %1429 = vmatprep.mubr.bf16.mxu1 %v1259_v56  ;;  %v1241_v61 = vadd.f32 1.0, %v2027_v57  ;;  %v1801_v57 = vld [vmem:[%s647_s23] ss:$0 sm:$0xff] }
 0x407   : > { %1430 = vmatmul.mubr.bf16.vlgmr.msra.gmra.mxu1 %v1258_v58  ;;  %v1248_v63 = vmul.f32 0.5, %v1240_v59  ;;  %v1255_v47 = vmul.f32 %v1247_v62, %v2317_v60  ;;  %v1802_v59 = vld [vmem:[%s650_s17] ss:$0 sm:$0xff] }
 0x408   : > { %v1249_v0 = vmul.f32 0.5, %v1241_v61 }
 0x409   : > { %v1256_v38 = vmul.f32 %v1248_v63, %v1182_v3 }
 0x40a   : > { %v1257_v1 = vmul.f32 %v1249_v0, %v1184_v11 }
 0x40b   : > { %v1260_v4 = vpack.c.bf16 %v1256_v38, %v1254_v35 }
 0x40c   : > { %v1261_v2 = vpack.c.bf16 %v1257_v1, %v1255_v47 }
 0x40e   : > { %1437 = vmatprep.mubr.bf16.mxu1 %v1261_v2 }
 0x40f   : > { %1438 = vmatmul.mubr.bf16.gmra.mxu1 %v1260_v4 }
 0x4c7   : > { %v1845_v7 = vpop.f32.mrf.mxu1 }
 0x4c9   : > { %v1846_v12 = vpop.f32.mrf.mxu1 }
 0x4ca   : > { %v1847_v13 = vadd.f32 %v1846_v12, %v1845_v7 }
 0x4cb   : > { %v1848_v14 = vpop.f32.mrf.mxu1 }
 0x4cc   : > { %v1432_v15 = vadd.f32 %v1847_v13, %v1784_v10 }
 0x4cd   : > { %v1849_v3 = vpop.f32.mrf.mxu1 }
 0x4ce   : > { %v1850_v16 = vadd.f32 %v1849_v3, %v1848_v14  ;;  %v1446_v60 = vadd.f32 %v1432_v15, %v2259_v5 }
 0x4cf   : > { %v1851_v11 = vpop.f32.mrf.mxu1 }
 0x4d0   : > { %v1435_v53 = vadd.f32 %v1850_v16, %v1784_v10  ;;  %1452 = vadd.xlane.f32.xlu0 %v1446_v60 }
 0x4d1   : > { %v1852_v17 = vpop.f32.mrf.mxu1 }
 0x4d2   : > { %v1853_v18 = vadd.f32 %v1852_v17, %v1851_v11  ;;  %v1447_v19 = vadd.f32 %v1435_v53, %v2261_v6 }
 0x4d3   : > { %v1854_v20 = vpop.f32.mrf.mxu1 }
 0x4d4   : > { %v1440_v21 = vadd.f32 %v1853_v18, %v1784_v10  ;;  %1454 = vadd.xlane.f32.xlu1 %v1447_v19 }
 0x4d5   : > { %v1855_v22 = vpop.f32.mrf.mxu1 }
 0x4d6   : > { %v1856_v23 = vadd.f32 %v1855_v22, %v1854_v20  ;;  %v1448_v24 = vadd.f32 %v1440_v21, %v2267_v9 }
 0x4d8   : > { %v1443_v25 = vadd.f32 %v1856_v23, %v1784_v10  ;;  %1456 = vadd.xlane.f32.xlu0 %v1448_v24 }
 0x4da   : > { %v1449_v26 = vadd.f32 %v1443_v25, %v2265_v8 }
 0x4dc   : > { %1458 = vadd.xlane.f32.xlu1 %v1449_v26 }
 0x559   : > { %v1453_v5 = vpop.xlane.xlu0 %1452 }
 0x55a   : > { %v1460_v27 = vmul.f32 0.0078125, %v1453_v5 }
 0x55c   : > { %v1464_v28 = vsub.f32 %v1446_v60, %v1460_v27 }
 0x55d   : > { %v1455_v29 = vpop.xlane.xlu1 %1454 }
 0x55e   : > { %v1461_v30 = vmul.f32 0.0078125, %v1455_v29  ;;  %v1468_v31 = vmul.f32 %v1464_v28, %v1464_v28 }
 0x560   : > { %v1465_v32 = vsub.f32 %v1447_v19, %v1461_v30  ;;  %1472 = vadd.xlane.f32.xlu0 %v1468_v31 }
 0x561   : > { %v1457_v6 = vpop.xlane.xlu0 %1456 }
 0x562   : > { %v1462_v33 = vmul.f32 0.0078125, %v1457_v6  ;;  %v1469_v34 = vmul.f32 %v1465_v32, %v1465_v32 }
 0x564   : > { %v1466_v36 = vsub.f32 %v1448_v24, %v1462_v33  ;;  %1474 = vadd.xlane.f32.xlu1 %v1469_v34 }
 0x565   : > { %v1459_v37 = vpop.xlane.xlu1 %1458 }
 0x566   : > { %v1463_v9 = vmul.f32 0.0078125, %v1459_v37  ;;  %v1470_v39 = vmul.f32 %v1466_v36, %v1466_v36 }
 0x568   : > { %v1467_v40 = vsub.f32 %v1449_v26, %v1463_v9  ;;  %1476 = vadd.xlane.f32.xlu0 %v1470_v39 }
 0x56a   : > { %v1471_v8 = vmul.f32 %v1467_v40, %v1467_v40 }
 0x56c   : > { %1478 = vadd.xlane.f32.xlu1 %v1471_v8 }
 0x5e9   : > { %v1473_v41 = vpop.xlane.xlu0 %1472 }
 0x5ea   : > { %v1480_v43 = vmul.f32 0.0078125, %v1473_v41 }
 0x5ec   : > { %v1484_v44 = vadd.f32 1e-05, %v1480_v43 }
 0x5ed   : > { %v1475_v45 = vpop.xlane.xlu1 %1474 }
 0x5ee   : > { %2028 = vrsqrt.f32 %v1484_v44  ;;  %v1481_v46 = vmul.f32 0.0078125, %v1475_v45 }
 0x5f0   : > { %v1485_v48 = vadd.f32 1e-05, %v1481_v46 }
 0x5f1   : > { %v1477_v49 = vpop.xlane.xlu0 %1476 }
 0x5f2   : > { %2030 = vrsqrt.f32 %v1485_v48  ;;  %v1482_v50 = vmul.f32 0.0078125, %v1477_v49 }
 0x5f4   : > { %v1486_v51 = vadd.f32 1e-05, %v1482_v50 }
 0x5f5   : > { %v1479_v52 = vpop.xlane.xlu1 %1478 }
 0x5f6   : > { %2032 = vrsqrt.f32 %v1486_v51  ;;  %v1483_v54 = vmul.f32 0.0078125, %v1479_v52 }
 0x5f8   : > { %v1487_v55 = vadd.f32 1e-05, %v1483_v54 }
 0x5fa   : > { %2034 = vrsqrt.f32 %v1487_v55 }
 0x5fb   : > { %v2029_v56 = vpop.eup %2028 }
 0x5fc   : > { %v1492_v58 = vmul.f32 %v2029_v56, %v1464_v28 }
 0x5fe   : > { %v1502_v61 = vmul.f32 %v1801_v57, %v1492_v58 }
 0x5ff   : > { %v2031_v62 = vpop.eup %2030 }
 0x600   : > { %v1512_v42 = vadd.f32 %v1802_v59, %v1502_v61  ;;  %v1493_v63 = vmul.f32 %v2031_v62, %v1465_v32 }
 0x602   : > { %1516 = vst [vmem:[%s659_s1] sm:$0xff] %v1512_v42  ;;  %v1503_v0 = vmul.f32 %v1801_v57, %v1493_v63 }
 0x603   : > { %v2033_v38 = vpop.eup %2032 }
 0x604   : > { %v1513_v47 = vadd.f32 %v1802_v59, %v1503_v0  ;;  %v1494_v1 = vmul.f32 %v2033_v38, %v1466_v36 }
 0x606   : > { %1517 = vst [vmem:[%s659_s1 + $0x8] sm:$0xff] %v1513_v47  ;;  %v1504_v35 = vmul.f32 %v1801_v57, %v1494_v1 }
 0x607   : > { %v2035_v2 = vpop.eup %2034 }
 0x608   : > { %v1514_v4 = vadd.f32 %v1802_v59, %v1504_v35  ;;  %v1495_v7 = vmul.f32 %v2035_v2, %v1467_v40 }
 0x60a   : > { %1518 = vst [vmem:[%s659_s1 + $0x10] sm:$0xff] %v1514_v4  ;;  %v1505_v10 = vmul.f32 %v1801_v57, %v1495_v7 }
 0x60c   : > { %v1515_v12 = vadd.f32 %v1802_v59, %v1505_v10 }
 0x60e   : > { %1519 = vst [vmem:[%s659_s1 + $0x18] sm:$0xff] %v1515_v12 }
 0x60f PF: > { %s23_s29 = sadd.s32 1, %s2074_s29   ;;  %s2387_s25 = smov %s2066_s27 }
 0x610   : > { %p20_p7 = scmp.ge.s32.totalorder %s23_s29, 6   ;;  %s2388_s26 = smov %s2070_s28 }
 0x611   : > { %s2389_s27 = smov %s2392_s30  ;;  %s2390_s28 = smov %s2396_s14 }
 0x612   :  { %22 = sbr.rel (!%p20_p7) target bundleno = 4 (0x4), region = 138 }

</bundles_post_ra>
